<compile_context>
chip_gen: v5e
topology: v5e:2x2
jax: 0.10.0
libtpu: 0.0.40
codegen_flags: <defaults>
</compile_context>

<pallas_src>
import functools
import math

import jax
import jax.numpy as jnp
from jax.experimental import pallas as pl
from jax.experimental.pallas import tpu as pltpu


# -----------------------------------------------------------------------------
# Tiling / compiler-param helpers
# -----------------------------------------------------------------------------

TM, TN, TK = 512, 1024, 1024   # tile targets; TK<=1024 keeps the FF=3072
                               # contraction inside v5e's scoped VMEM.


def _tile(dim, target, align):
    """Largest multiple of `align` that divides `dim` and is <= target.

    Falls back to the full dim only if no aligned divisor exists (keeps the
    BlockSpec "(8,128)-divisible or full dim" rule).  Production fix for ragged
    shapes would be padding M / FF to a tile multiple.
    """
    if dim <= target:
        return dim
    t = (target // align) * align
    while t >= align:
        if dim % t == 0:
            return t
        t -= align
    return dim


def _nbytes(shape, dtype):
    return int(math.prod(shape)) * jnp.dtype(dtype).itemsize


def _cparams(dims, est_bytes):
    """CompilerParams with explicit VMEM budget derived from the tile bytes.

    est_bytes = sum of block bytes + large in-kernel intermediates; x4 covers
    double buffering + compiler temporaries.  Clamped to [32 MiB, 64 MiB]
    (64 MiB = v7x physical VMEM).
    """
    limit = int(min(max(4 * est_bytes + (8 << 20), 32 << 20), 64 << 20))
    return pltpu.CompilerParams(dimension_semantics=dims,
                                vmem_limit_bytes=limit)


def _act(y, activation):
    if activation == "relu":
        return jnp.maximum(y, 0.0)
    if activation == "gelu":
        # TODO(synk): HF BERT uses exact erf-GELU; tanh approximation used here
        #             (Mosaic erf lowering support is uncertain).
        c = jnp.float32(0.7978845608028654)  # sqrt(2/pi)
        return 0.5 * y * (1.0 + jnp.tanh(c * (y + 0.044715 * y * y * y)))
    return y


# -----------------------------------------------------------------------------
# Pallas kernels
# -----------------------------------------------------------------------------

def _dense_kernel_1k(x_ref, w_ref, b_ref, o_ref, *, activation):
    """Single-K-step y = act(x @ W + b): no accumulator scratch / init-finalize."""
    y = jnp.dot(x_ref[...], w_ref[...], preferred_element_type=jnp.float32)
    y = y + b_ref[...].astype(jnp.float32)
    o_ref[...] = _act(y, activation).astype(o_ref.dtype)


def _dense_kernel(x_ref, w_ref, b_ref, o_ref, acc_ref, *, activation):
    """Tiled y = act(x @ W + b); grid = (M/tm, N/tn, K/tk), K innermost."""
    @pl.when(pl.program_id(2) == 0)
    def _():
        acc_ref[...] = jnp.zeros_like(acc_ref)

    acc_ref[...] += jnp.dot(x_ref[...], w_ref[...],
                            preferred_element_type=jnp.float32)

    @pl.when(pl.program_id(2) == pl.num_programs(2) - 1)
    def _():
        y = acc_ref[...] + b_ref[...].astype(jnp.float32)
        o_ref[...] = _act(y, activation).astype(o_ref.dtype)


def _dense_add_ln_kernel_1k(x_ref, w_ref, b_ref, r_ref, g_ref, bt_ref,
                            o_ref, *, eps):
    """Single-K-step LayerNorm((x @ W + b) + residual)."""
    y = jnp.dot(x_ref[...], w_ref[...], preferred_element_type=jnp.float32)
    y = y + b_ref[...].astype(jnp.float32) + r_ref[...].astype(jnp.float32)
    mu = jnp.mean(y, axis=-1, keepdims=True)
    yc = y - mu
    var = jnp.mean(yc * yc, axis=-1, keepdims=True)
    o_ref[...] = (yc * jax.lax.rsqrt(var + eps) * g_ref[...]
                  + bt_ref[...]).astype(o_ref.dtype)


def _dense_add_ln_kernel(x_ref, w_ref, b_ref, r_ref, g_ref, bt_ref,
                         o_ref, acc_ref, *, eps):
    """Tiled LayerNorm((x @ W + b) + residual); grid = (M/tm, K/tk), N = full H."""
    @pl.when(pl.program_id(1) == 0)
    def _():
        acc_ref[...] = jnp.zeros_like(acc_ref)

    acc_ref[...] += jnp.dot(x_ref[...], w_ref[...],
                            preferred_element_type=jnp.float32)

    @pl.when(pl.program_id(1) == pl.num_programs(1) - 1)
    def _():
        y = (acc_ref[...] + b_ref[...].astype(jnp.float32)
             + r_ref[...].astype(jnp.float32))
        mu = jnp.mean(y, axis=-1, keepdims=True)
        yc = y - mu
        var = jnp.mean(yc * yc, axis=-1, keepdims=True)
        o_ref[...] = (yc * jax.lax.rsqrt(var + eps) * g_ref[...]
                      + bt_ref[...]).astype(o_ref.dtype)


def _ln_kernel(x_ref, g_ref, b_ref, o_ref, *, eps):
    """LayerNorm over the last axis (no residual)."""
    x = x_ref[...].astype(jnp.float32)
    mu = jnp.mean(x, axis=-1, keepdims=True)
    xc = x - mu
    var = jnp.mean(xc * xc, axis=-1, keepdims=True)
    o_ref[...] = (xc * jax.lax.rsqrt(var + eps) * g_ref[...]
                  + b_ref[...]).astype(o_ref.dtype)


def _attn_kernel(q_ref, k_ref, v_ref, bias_ref, o_ref):
    """One head-group of one batch element; q/k/v/o blocks: (1, HG, S, DH)."""
    q = q_ref[0]                 # (HG, S, DH) bf16; 1/sqrt(DH) folded into Wq
    k = k_ref[0]                 # (HG, S, DH)
    v = v_ref[0]                 # (HG, S, DH)
    bias = bias_ref[0]           # (1, S) f32 additive pad mask

    # Batched contraction over heads: one einsum per group, MXU pushes pipeline
    # back-to-back; no per-head Python loop, no lane-interleave concat.
    s = jnp.einsum("hqd,hkd->hqk", q, k, preferred_element_type=jnp.float32)
    s = s + bias[None, :, :]
    s = s - jnp.max(s, axis=-1, keepdims=True)
    p = jnp.exp(s)
    p = p * pl.reciprocal(jnp.sum(p, axis=-1, keepdims=True), approx=True)
    ctx = jnp.einsum("hqk,hkd->hqd", p.astype(jnp.bfloat16), v,
                     preferred_element_type=jnp.float32)
    o_ref[0] = ctx.astype(o_ref.dtype)


def _masked_mean_kernel(h_ref, m_ref, o_ref, num_ref, den_ref):
    """Streaming masked mean over the sequence axis (S tiled, f32 accumulators)."""
    @pl.when(pl.program_id(1) == 0)
    def _():
        num_ref[...] = jnp.zeros_like(num_ref)
        den_ref[...] = jnp.zeros_like(den_ref)

    h = h_ref[...].astype(jnp.float32)       # (1, ts, H)
    m = m_ref[...]                           # (1, ts, 1) f32
    num_ref[...] += jnp.sum(h * m, axis=1)   # (1, H)
    den_ref[...] += jnp.sum(m, axis=1)       # (1, 1)

    @pl.when(pl.program_id(1) == pl.num_programs(1) - 1)
    def _():
        o_ref[...] = (num_ref[...] / (den_ref[...] + 1e-6)).astype(o_ref.dtype)


# -----------------------------------------------------------------------------
# Wrappers
# -----------------------------------------------------------------------------

def dense(x, w, b, activation="none", out_dtype=jnp.bfloat16):
    M, K = x.shape
    _, N = w.shape
    tm, tn, tk = _tile(M, TM, 8), _tile(N, TN, 128), _tile(K, TK, 128)
    est = (_nbytes((tm, tk), x.dtype) + _nbytes((tk, tn), w.dtype)
           + _nbytes((1, tn), b.dtype) + _nbytes((tm, tn), out_dtype)
           + _nbytes((tm, tn), jnp.float32))

    if tk == K:
        # Whole contraction fits one tile (e.g. K = H = 768): skip accumulator.
        return pl.pallas_call(
            functools.partial(_dense_kernel_1k, activation=activation),
            out_shape=jax.ShapeDtypeStruct((M, N), out_dtype),
            grid=(M // tm, N // tn),
            in_specs=[
                pl.BlockSpec((tm, K), lambda m, n: (m, 0)),
                pl.BlockSpec((K, tn), lambda m, n: (0, n)),
                pl.BlockSpec((1, tn), lambda m, n: (0, n)),
            ],
            out_specs=pl.BlockSpec((tm, tn), lambda m, n: (m, n)),
            compiler_params=_cparams(("parallel", "parallel"), est),
        )(x, w, b)

    return pl.pallas_call(
        functools.partial(_dense_kernel, activation=activation),
        out_shape=jax.ShapeDtypeStruct((M, N), out_dtype),
        grid=(M // tm, N // tn, K // tk),
        in_specs=[
            pl.BlockSpec((tm, tk), lambda m, n, k: (m, k)),
            pl.BlockSpec((tk, tn), lambda m, n, k: (k, n)),
            pl.BlockSpec((1, tn), lambda m, n, k: (0, n)),
        ],
        out_specs=pl.BlockSpec((tm, tn), lambda m, n, k: (m, n)),
        scratch_shapes=[pltpu.VMEM((tm, tn), jnp.float32)],
        compiler_params=_cparams(("parallel", "parallel", "arbitrary"), est),
    )(x, w, b)


def dense_add_ln(x, w, b, residual, gamma, beta, eps=1e-12):
    """LayerNorm((x @ W + b) + residual), fused; N (=H) kept whole for the LN reduce."""
    M, K = x.shape
    _, N = w.shape
    tm, tk = _tile(M, TM, 8), _tile(K, TK, 128)
    est = (_nbytes((tm, tk), x.dtype) + _nbytes((tk, N), w.dtype)
           + _nbytes((tm, N), residual.dtype) + 3 * _nbytes((1, N), jnp.float32)
           + _nbytes((tm, N), jnp.bfloat16) + _nbytes((tm, N), jnp.float32))

    if tk == K:
        return pl.pallas_call(
            functools.partial(_dense_add_ln_kernel_1k, eps=eps),
            out_shape=jax.ShapeDtypeStruct((M, N), jnp.bfloat16),
            grid=(M // tm,),
            in_specs=[
                pl.BlockSpec((tm, K), lambda m: (m, 0)),
                pl.BlockSpec((K, N), lambda m: (0, 0)),
                pl.BlockSpec((1, N), lambda m: (0, 0)),
                pl.BlockSpec((tm, N), lambda m: (m, 0)),
                pl.BlockSpec((1, N), lambda m: (0, 0)),
                pl.BlockSpec((1, N), lambda m: (0, 0)),
            ],
            out_specs=pl.BlockSpec((tm, N), lambda m: (m, 0)),
            compiler_params=_cparams(("parallel",), est),
        )(x, w, b, residual, gamma, beta)

    return pl.pallas_call(
        functools.partial(_dense_add_ln_kernel, eps=eps),
        out_shape=jax.ShapeDtypeStruct((M, N), jnp.bfloat16),
        grid=(M // tm, K // tk),
        in_specs=[
            pl.BlockSpec((tm, tk), lambda m, k: (m, k)),
            pl.BlockSpec((tk, N), lambda m, k: (k, 0)),
            pl.BlockSpec((1, N), lambda m, k: (0, 0)),
            pl.BlockSpec((tm, N), lambda m, k: (m, 0)),   # residual, resident over k
            pl.BlockSpec((1, N), lambda m, k: (0, 0)),
            pl.BlockSpec((1, N), lambda m, k: (0, 0)),
        ],
        out_specs=pl.BlockSpec((tm, N), lambda m, k: (m, 0)),
        scratch_shapes=[pltpu.VMEM((tm, N), jnp.float32)],
        compiler_params=_cparams(("parallel", "arbitrary"), est),
    )(x, w, b, residual, gamma, beta)


def layernorm(x, gamma, beta, eps=1e-12):
    M, H = x.shape
    tm = _tile(M, TM, 8)
    est = (_nbytes((tm, H), x.dtype) + 2 * _nbytes((1, H), jnp.float32)
           + _nbytes((tm, H), jnp.bfloat16))
    return pl.pallas_call(
        functools.partial(_ln_kernel, eps=eps),
        out_shape=jax.ShapeDtypeStruct((M, H), jnp.bfloat16),
        grid=(M // tm,),
        in_specs=[
            pl.BlockSpec((tm, H), lambda m: (m, 0)),
            pl.BlockSpec((1, H), lambda m: (0, 0)),
            pl.BlockSpec((1, H), lambda m: (0, 0)),
        ],
        out_specs=pl.BlockSpec((tm, H), lambda m: (m, 0)),
        compiler_params=_cparams(("parallel",), est),
    )(x, gamma, beta)


def multihead_attention(q, k, v, bias):
    """q/k/v: (B, NH, S, DH) head-major; bias: (B, 1, S) -> out (B, NH, S, DH)."""
    B, NH, S, DH = q.shape
    # Two head-groups when possible: second parallel grid axis (feeds both v7x
    # TensorCores) and halves the per-program live set.
    ng = 2 if (NH % 2 == 0 and NH >= 2) else 1
    hg = NH // ng
    est = (4 * _nbytes((1, hg, S, DH), jnp.bfloat16)
           + _nbytes((1, 1, S), jnp.float32)
           + 2 * _nbytes((hg, S, S), jnp.float32))    # scores + probs live set
    return pl.pallas_call(
        _attn_kernel,
        out_shape=jax.ShapeDtypeStruct((B, NH, S, DH), jnp.bfloat16),
        grid=(B, ng),
        in_specs=[
            pl.BlockSpec((1, hg, S, DH), lambda b, g: (b, g, 0, 0)),
            pl.BlockSpec((1, hg, S, DH), lambda b, g: (b, g, 0, 0)),
            pl.BlockSpec((1, hg, S, DH), lambda b, g: (b, g, 0, 0)),
            pl.BlockSpec((1, 1, S), lambda b, g: (b, 0, 0)),
        ],
        out_specs=pl.BlockSpec((1, hg, S, DH), lambda b, g: (b, g, 0, 0)),
        compiler_params=_cparams(("parallel", "parallel"), est),
    )(q, k, v, bias)


def masked_mean(h, m):
    """sum(h * m, axis=1) / (sum(m, axis=1) + 1e-6), tiled over the sequence axis."""
    B, S, H = h.shape
    ts = _tile(S, 512, 8)
    est = (_nbytes((1, ts, H), h.dtype) + _nbytes((1, ts, 1), m.dtype)
           + _nbytes((1, H), jnp.float32) + _nbytes((1, ts, H), jnp.float32))
    return pl.pallas_call(
        _masked_mean_kernel,
        out_shape=jax.ShapeDtypeStruct((B, H), jnp.bfloat16),
        grid=(B, S // ts),
        in_specs=[
            pl.BlockSpec((1, ts, H), lambda b, s: (b, s, 0)),
            pl.BlockSpec((1, ts, 1), lambda b, s: (b, s, 0)),
        ],
        out_specs=pl.BlockSpec((1, H), lambda b, s: (b, 0)),
        scratch_shapes=[pltpu.VMEM((1, H), jnp.float32),
                        pltpu.VMEM((1, 1), jnp.float32)],
        compiler_params=_cparams(("parallel", "arbitrary"), est),
    )(h, m)


# -----------------------------------------------------------------------------
# Model (small synthetic PubMedBERT configuration)
# -----------------------------------------------------------------------------

CFG = dict(
    vocab_size=30,
    hidden=32,           # stands in for 768
    num_heads=2,         # stands in for 12
    head_dim=16,         # stands in for 64
    intermediate=64,     # stands in for 3072
    num_layers=2,        # stands in for 12
    max_pos=32,
    output_dim=16,       # stands in for 512
)

PAD_IDX, CLS_IDX, SEP_IDX, MASK_IDX = 0, 2, 3, 4


def init_params(key, cfg):
    H, FF, OD = cfg["hidden"], cfg["intermediate"], cfg["output_dim"]
    scale = 1.0 / math.sqrt(cfg["head_dim"])

    def w(k, shape):
        # bf16 weight storage (halves HBM traffic / VMEM; MXU-native dtype)
        return (jax.random.normal(k, shape, dtype=jnp.float32) * 0.02
                ).astype(jnp.bfloat16)

    def w32(k, shape):
        return jax.random.normal(k, shape, dtype=jnp.float32) * 0.02

    keys = iter(jax.random.split(key, 256))
    p = {
        "word_emb": w32(next(keys), (cfg["vocab_size"], H)),
        "pos_emb": w32(next(keys), (cfg["max_pos"], H)),
        "type_emb": w32(next(keys), (2, H)),
        "emb_ln_g": jnp.ones((1, H), jnp.float32),
        "emb_ln_b": jnp.zeros((1, H), jnp.float32),
        "layers": [],
    }
    for _ in range(cfg["num_layers"]):
        # 1/sqrt(head_dim) folded into the Q third of the fused QKV weight
        # (and its bias) at parameter-prep time -> no per-token scaling at runtime.
        wq = w32(next(keys), (H, H)) * scale
        wk = w32(next(keys), (H, H))
        wv = w32(next(keys), (H, H))
        layer = {
            "w_qkv": jnp.concatenate([wq, wk, wv], axis=1).astype(jnp.bfloat16),
            "b_qkv": jnp.zeros((1, 3 * H), jnp.float32),     # q-bias would also be scaled
            "wo": w(next(keys), (H, H)), "bo": jnp.zeros((1, H), jnp.float32),
            "ln1_g": jnp.ones((1, H), jnp.float32),
            "ln1_b": jnp.zeros((1, H), jnp.float32),
            "w1": w(next(keys), (H, FF)), "b1": jnp.zeros((1, FF), jnp.float32),
            "w2": w(next(keys), (FF, H)), "b2": jnp.zeros((1, H), jnp.float32),
            "ln2_g": jnp.ones((1, H), jnp.float32),
            "ln2_b": jnp.zeros((1, H), jnp.float32),
        }
        p["layers"].append(layer)

    # torchdrug MLP(hidden_dims=[H, OD], activation='relu'):
    #   Linear(H,H) -> relu -> Linear(H,OD)
    p["text_mlp"] = {
        "w1": w(next(keys), (H, H)), "b1": jnp.zeros((1, H), jnp.float32),
        "w2": w(next(keys), (H, OD)), "b2": jnp.zeros((1, OD), jnp.float32),
    }
    p["word_mlp"] = {
        "w1": w(next(keys), (H, H)), "b1": jnp.zeros((1, H), jnp.float32),
        "w2": w(next(keys), (H, OD)), "b2": jnp.zeros((1, OD), jnp.float32),
    }
    return p


def mlp_head(x, head):
    h = dense(x, head["w1"], head["b1"], activation="relu")
    return dense(h, head["w2"], head["b2"], activation="none",
                 out_dtype=jnp.float32)


def pubmedbert_forward(params, input_ids, attention_mask, cfg=CFG):
    B, S = input_ids.shape
    H, NH, DH = cfg["hidden"], cfg["num_heads"], cfg["head_dim"]

    # --- BERT embeddings (gathers are plain-JAX glue) ---
    word = jnp.take(params["word_emb"], input_ids, axis=0)            # (B,S,H)
    pos = params["pos_emb"][:S][None, :, :]                           # (1,S,H)
    tok_type = params["type_emb"][0][None, None, :]                   # token_type_ids = 0
    emb = (word + pos + tok_type).astype(jnp.float32).reshape(B * S, H)

    xf = layernorm(emb, params["emb_ln_g"], params["emb_ln_b"])       # (B*S,H) bf16

    # additive attention bias: mask only pads (HF extended attention mask)
    bias = ((1.0 - attention_mask.astype(jnp.float32)) * -1e9).reshape(B, 1, S)

    # --- transformer encoder layers ---
    for lyr in params["layers"]:
        qkv = dense(xf, lyr["w_qkv"], lyr["b_qkv"])                   # (B*S, 3H) bf16
        # head-major (3, B, NH, S, DH) layout: lane-aligned per-head blocks for
        # the attention kernel's batched-over-heads einsum.
        qkv_h = qkv.reshape(B, S, 3, NH, DH).transpose(2, 0, 3, 1, 4)
        ctx = multihead_attention(qkv_h[0], qkv_h[1], qkv_h[2], bias) # (B,NH,S,DH)
        ctx = ctx.transpose(0, 2, 1, 3).reshape(B * S, H)             # head-concat layout

        # attention output projection + residual + LayerNorm (fused epilogue)
        xf = dense_add_ln(ctx, lyr["wo"], lyr["bo"], xf,
                          lyr["ln1_g"], lyr["ln1_b"])

        ff = dense(xf, lyr["w1"], lyr["b1"], activation="gelu")
        xf = dense_add_ln(ff, lyr["w2"], lyr["b2"], xf,
                          lyr["ln2_g"], lyr["ln2_b"])

    last_hidden = xf.reshape(B, S, H)

    # --- readout == 'mean': mask out CLS/SEP/PAD then masked mean over seq ---
    is_special = ((input_ids == CLS_IDX) |
                  (input_ids == SEP_IDX) |
                  (input_ids == PAD_IDX))
    text_mask = (~is_special).astype(jnp.float32)[..., None]          # (B,S,1)
    pooled = masked_mean(last_hidden, text_mask)                      # (B,H) bf16

    # --- heads ---
    text_feature = mlp_head(pooled, params["text_mlp"])               # (B,OD) f32
    word_feature = mlp_head(xf, params["word_mlp"]).reshape(
        B, S, cfg["output_dim"])                                      # (B,S,OD) f32

    return {"text_feature": text_feature, "word_feature": word_feature}


# -----------------------------------------------------------------------------
# Main
# -----------------------------------------------------------------------------

if __name__ == "__main__":
    key = jax.random.PRNGKey(0)
    k_param, k_ids = jax.random.split(key)

    params = init_params(k_param, CFG)

    B, S = 2, 8
    # deterministic synthetic token ids: [CLS] tokens ... [SEP] (+ PAD tail)
    body = jax.random.randint(k_ids, (B, S), minval=5, maxval=CFG["vocab_size"])
    input_ids = body.at[:, 0].set(CLS_IDX)
    input_ids = input_ids.at[0, S - 1].set(SEP_IDX)
    input_ids = input_ids.at[1, S - 3].set(SEP_IDX)
    input_ids = input_ids.at[1, S - 2:].set(PAD_IDX)          # pad tail of sample 1
    input_ids = input_ids.astype(jnp.int32)
    attention_mask = (input_ids != PAD_IDX).astype(jnp.int32)

    out = pubmedbert_forward(params, input_ids, attention_mask)
    jax.block_until_ready(out)

    assert out["text_feature"].shape == (B, CFG["output_dim"])
    assert out["word_feature"].shape == (B, S, CFG["output_dim"])
    assert bool(jnp.all(jnp.isfinite(out["text_feature"])))
    assert bool(jnp.all(jnp.isfinite(out["word_feature"])))
    print("KERNEL_OK")
</pallas_src>

<mosaic_0001>
module attributes {stable_mosaic.version = 11 : i64} {
  func.func @_ln_kernel(%arg0: i32, %arg1: memref<16x32xf32, #tpu.memory_space<vmem>>, %arg2: memref<1x32xf32, #tpu.memory_space<vmem>>, %arg3: memref<1x32xf32, #tpu.memory_space<vmem>>, %arg4: memref<16x32xbf16, #tpu.memory_space<vmem>>) attributes {dimension_semantics = [#tpu.dimension_semantics<parallel>], iteration_bounds = array<i64: 1>, scalar_prefetch = 0 : i64, scratch_operands = 0 : i64, tpu.core_type = #tpu.core_type<tc>, window_params = [{transform_indices = @transform_0, window_bounds = array<i64: 16, 32>}, {pipeline_mode = #tpu.pipeline_mode<synchronous>, transform_indices = @transform_1, window_bounds = array<i64: 1, 32>}, {pipeline_mode = #tpu.pipeline_mode<synchronous>, transform_indices = @transform_2, window_bounds = array<i64: 1, 32>}, {transform_indices = @transform_3, window_bounds = array<i64: 16, 32>}]} {
    %c0 = arith.constant 0 : index
    %c0_0 = arith.constant 0 : index
    %0 = vector.load %arg1[%c0, %c0_0] : memref<16x32xf32, #tpu.memory_space<vmem>>, vector<16x32xf32>
    %cst = arith.constant dense<0.000000e+00> : vector<16xf32>
    %1 = vector.multi_reduction <add>, %0, %cst [1] : vector<16x32xf32> to vector<16xf32>
    %2 = vector.shape_cast %1 : vector<16xf32> to vector<16x1xf32>
    %cst_1 = arith.constant 3.200000e+01 : f32
    %3 = vector.broadcast %cst_1 : f32 to vector<16x1xf32>
    %4 = arith.divf %2, %3 : vector<16x1xf32>
    %5 = vector.broadcast %4 : vector<16x1xf32> to vector<16x32xf32>
    %6 = arith.subf %0, %5 : vector<16x32xf32>
    %7 = arith.mulf %6, %6 : vector<16x32xf32>
    %cst_2 = arith.constant dense<0.000000e+00> : vector<16xf32>
    %8 = vector.multi_reduction <add>, %7, %cst_2 [1] : vector<16x32xf32> to vector<16xf32>
    %9 = vector.shape_cast %8 : vector<16xf32> to vector<16x1xf32>
    %cst_3 = arith.constant 3.200000e+01 : f32
    %10 = vector.broadcast %cst_3 : f32 to vector<16x1xf32>
    %11 = arith.divf %9, %10 : vector<16x1xf32>
    %cst_4 = arith.constant 9.99999996E-13 : f32
    %12 = vector.broadcast %cst_4 : f32 to vector<16x1xf32>
    %13 = arith.addf %11, %12 : vector<16x1xf32>
    %14 = math.rsqrt %13 : vector<16x1xf32>
    %15 = vector.broadcast %14 : vector<16x1xf32> to vector<16x32xf32>
    %16 = arith.mulf %6, %15 : vector<16x32xf32>
    %c0_5 = arith.constant 0 : index
    %c0_6 = arith.constant 0 : index
    %17 = vector.load %arg2[%c0_5, %c0_6] : memref<1x32xf32, #tpu.memory_space<vmem>>, vector<1x32xf32>
    %18 = vector.broadcast %17 : vector<1x32xf32> to vector<16x32xf32>
    %19 = arith.mulf %16, %18 : vector<16x32xf32>
    %c0_7 = arith.constant 0 : index
    %c0_8 = arith.constant 0 : index
    %20 = vector.load %arg3[%c0_7, %c0_8] : memref<1x32xf32, #tpu.memory_space<vmem>>, vector<1x32xf32>
    %21 = vector.broadcast %20 : vector<1x32xf32> to vector<16x32xf32>
    %22 = arith.addf %19, %21 : vector<16x32xf32>
    %23 = arith.truncf %22 : vector<16x32xf32> to vector<16x32xbf16>
    %c0_9 = arith.constant 0 : index
    %c0_10 = arith.constant 0 : index
    %24 = vector.load %arg4[%c0_9, %c0_10] : memref<16x32xbf16, #tpu.memory_space<vmem>>, vector<16x32xbf16>
    tpu.vector_store %arg4[%c0_9, %c0_10], %23 {strides = array<i32>} : memref<16x32xbf16, #tpu.memory_space<vmem>>, vector<16x32xbf16>,
    return
  }
  func.func @transform_0(%arg0: i32) -> (i32, i32) {
    %c0_i32 = arith.constant 0 : i32
    %c0_i32_0 = arith.constant 0 : i32
    return %arg0, %c0_i32 : i32, i32
  }
  func.func @transform_1(%arg0: i32) -> (i32, i32) {
    %c0_i32 = arith.constant 0 : i32
    %c0_i32_0 = arith.constant 0 : i32
    %c0_i32_1 = arith.constant 0 : i32
    return %c0_i32, %c0_i32_0 : i32, i32
  }
  func.func @transform_2(%arg0: i32) -> (i32, i32) {
    %c0_i32 = arith.constant 0 : i32
    %c0_i32_0 = arith.constant 0 : i32
    %c0_i32_1 = arith.constant 0 : i32
    return %c0_i32, %c0_i32_0 : i32, i32
  }
  func.func @transform_3(%arg0: i32) -> (i32, i32) {
    %c0_i32 = arith.constant 0 : i32
    %c0_i32_0 = arith.constant 0 : i32
    return %arg0, %c0_i32 : i32, i32
  }
}

</mosaic_0001>

<bundles_post_ra>
// kernel: tpu_custom_call.1
= control target key start
LH: loop header
LB: loop body
LE: loop exit
PB: predicated region body
PF: predicated region fallthrough
CT: control target
= control target key end

     0   :  { %8 = vsyncpa [#allocation3], 0  ;;  %s274_s0 = inlined_call_operand.hbm [shape: f32[16,32], index: 0, kind: input, shape index: {}]   ;;  %s275_s1 = inlined_call_operand.hbm [shape: f32[1,32], index: 1, kind: input, shape index: {}]   ;;  %s276_s2 = inlined_call_operand.vmem [shape: f32[1,32], index: 2, kind: input, shape index: {}]   ;;  %s277_s3 = inlined_call_operand.hbm [shape: bf16[16,32], index: 3, kind: output, shape index: {}]  }
   0x1   :  { %9 = vsyncpa [#allocation6], 0 }
   0x2   :  { %10 = vsyncpa [#allocation4], 0  ;;  %s15_s14 = sshll.u32 %s274_s0, 4  ;;  %s230_s15 = smov [#allocation2]   ;;  %s16_s14 = int_to_ptr.hbm [resolvable:$true] %s15_s14 }
   0x3   :  { %s17_s16 = sshll.u32 %s230_s15, 4  ;;  %s29_s19 = sshll.u32 %s275_s1, 4  ;;  %s18_s16 = int_to_ptr.vmem [resolvable:$true] %s17_s16  ;;  %s30_s19 = int_to_ptr.hbm [resolvable:$true] %s29_s19 }
   0x4   :  { %s231_s20 = smov 128   ;;  %s232_s21 = smov 8  }
   0x5   :  { %23 = dma.hbm_to_vmem [thread:$0]  %s16_s14, 256, %s18_s16, [#allocation3], %s231_s20, %s231_s20, %s232_s21  }
   0x6   :  { %s233_s22 = smov [#allocation5]  }
   0x7   :  { %s31_s23 = sshll.u32 %s233_s22, 4  ;;  %s32_s23 = int_to_ptr.vmem [resolvable:$true] %s31_s23 }
   0x8   :  { %34 = dma.hbm_to_vmem [thread:$0]  %s30_s19, 16, %s32_s23, [#allocation6]  }
   0x9   :  { %224 = dma.done.wait [#allocation3], 256  }
   0xa   :  { %225 = vsyncadd [#allocation3], 4294967040 }
   0xb   :  { %226 = dma.done.wait [#allocation6], 16  }
   0xc   :  { %227 = vsyncadd [#allocation6], 4294967280  ;;  %vm47_vm0 = vcmask 261120   ;;  %v45_v0 = vld [vmem:[#allocation2] sm:$0xff]  ;;  %v46_v2 = vld [vmem:[#allocation2 + $0x8] sm:$0xff]  ;;  %v234_v4 = vmov 32.0  }
   0xd   :  { %v48_v1 = vsel %vm47_vm0, %v45_v0, 0.0  ;;  %v51_v3 = vsel %vm47_vm0, %v46_v2, 0.0  ;;  %146 = vrcp.f32 %v234_v4  ;;  %v144_v35 = vld [vmem:[#allocation5] ss:$0 sm:$0xff]  ;;  %v145_v38 = vld [vmem:[%s276_s2] ss:$0 sm:$0xff] }
   0xe   :  { %49 = vadd.xlane.f32.xlu0 %v48_v1  ;;  %vm113_vm7 = vcmask 257024   ;;  %s235_s24 = smov [#allocation7]   ;;  %s122_s2 = sshll.u32 %s277_s3, 4  ;;  %s123_s2 = int_to_ptr.hbm [resolvable:$true] %s122_s2 }
   0xf   :  { %s120_s25 = sshll.u32 %s235_s24, 4  ;;  %s236_s28 = smov 64   ;;  %s121_s25 = int_to_ptr.vmem [resolvable:$true] %s120_s25 }
  0x10   :  { %s237_s29 = smov 4  }
  0x13   :  { %v147_v5 = vpop.eup %146 }
  0x14   :  { %v55_v6 = vmul.f32 32.0, %v147_v5  ;;  %vm59_vm1 = vweird.f32 %v147_v5 }
  0x16   :  { %52 = vadd.xlane.f32.xlu0 %v51_v3  ;;  %v56_v7 = vsub.f32 1.0, %v55_v6 }
  0x18   :  { %v57_v8 = vmul.f32 %v147_v5, %v56_v7 }
  0x1a   :  { %v58_v9 = vadd.f32 %v147_v5, %v57_v8 }
  0x1c   :  { %v60_v10 = vsel %vm59_vm1, %v147_v5, %v58_v9 }
  0x81   :  { %v50_v11 = vpop.xlane.xlu0 %49 }
  0x82   :  { %v61_v12 = vmul.f32 %v60_v10, %v50_v11 }
  0x84   :  { %v63_v13 = vsub.f32 %v45_v0, %v61_v12 }
  0x86   :  { %v65_v14 = vmul.f32 %v63_v13, %v63_v13 }
  0x88   :  { %v67_v15 = vsel %vm47_vm0, %v65_v14, 0.0 }
  0x89   :  { %68 = vadd.xlane.f32.xlu1 %v67_v15  ;;  %v53_v16 = vpop.xlane.xlu0 %52 }
  0x8a   :  { %v62_v17 = vmul.f32 %v60_v10, %v53_v16 }
  0x8c   :  { %v64_v18 = vsub.f32 %v46_v2, %v62_v17 }
  0x8e   :  { %v66_v19 = vmul.f32 %v64_v18, %v64_v18 }
  0x90   :  { %v70_v20 = vsel %vm47_vm0, %v66_v19, 0.0 }
  0x91   :  { %71 = vadd.xlane.f32.xlu1 %v70_v20 }
  0xfc   :  { %v69_v21 = vpop.xlane.xlu1 %68 }
  0xfd   :  { %v73_v22 = vmul.f32 %v69_v21, %v60_v10 }
  0xff   :  { %v75_v23 = vadd.f32 1e-12, %v73_v22 }
 0x101   :  { %148 = vrsqrt.f32 %v75_v23  ;;  %vm83_vm3 = vweird.f32 %v75_v23 }
 0x104   :  { %v72_v24 = vpop.xlane.xlu1 %71 }
 0x105   :  { %v74_v25 = vmul.f32 %v72_v24, %v60_v10 }
 0x107   :  { %v149_v26 = vpop.eup %148  ;;  %v76_v27 = vadd.f32 1e-12, %v74_v25 }
 0x108   :  { %v78_v28 = vmul.f32 %v149_v26, %v75_v23  ;;  %vm84_vm2 = vweird.f32 %v149_v26 }
 0x109   :  { %150 = vrsqrt.f32 %v76_v27  ;;  %vm85_vm4 = vmor %vm83_vm3, %vm84_vm2  ;;  %vm93_vm6 = vweird.f32 %v76_v27 }
 0x10a   :  { %v79_v29 = vmul.f32 %v149_v26, %v78_v28 }
 0x10c   :  { %v80_v30 = vmul.f32 0.5, %v79_v29 }
 0x10e   :  { %v81_v31 = vsub.f32 1.5, %v80_v30 }
 0x10f   :  { %v151_v32 = vpop.eup %150 }
 0x110   :  { %v82_v33 = vmul.f32 %v149_v26, %v81_v31  ;;  %v88_v34 = vmul.f32 %v151_v32, %v76_v27  ;;  %vm94_vm5 = vweird.f32 %v151_v32 }
 0x111   :  { %vm95_vm8 = vmor %vm93_vm6, %vm94_vm5 }
 0x112   :  { %v86_v36 = vsel %vm85_vm4, %v149_v26, %v82_v33  ;;  %v89_v37 = vmul.f32 %v151_v32, %v88_v34 }
 0x113   :  { %v97_v39 = vmul.f32 %v86_v36, %v63_v13 }
 0x114   :  { %v90_v40 = vmul.f32 0.5, %v89_v37 }
 0x115   :  { %v103_v41 = vmul.f32 %v144_v35, %v97_v39 }
 0x116   :  { %v91_v42 = vsub.f32 1.5, %v90_v40 }
 0x117   :  { %v109_v43 = vadd.f32 %v145_v38, %v103_v41 }
 0x118   :  { %v92_v44 = vmul.f32 %v151_v32, %v91_v42 }
 0x119   :  { %v111_v45 = vpack.c.bf16 %v109_v43, %v109_v43 }
 0x11a   :  { %v96_v46 = vsel %vm95_vm8, %v151_v32, %v92_v44 }
 0x11b   :  { %v98_v47 = vmul.f32 %v96_v46, %v64_v18  ;;  %114 = vst.msk [vmem:[#allocation7] sm:$0xf] %vm113_vm7, %v111_v45 }
 0x11d   :  { %v104_v48 = vmul.f32 %v144_v35, %v98_v47 }
 0x11f   :  { %v110_v49 = vadd.f32 %v145_v38, %v104_v48 }
 0x121   :  { %v112_v50 = vpack.c.bf16 %v110_v49, %v110_v49 }
 0x123   :  { %115 = vst.msk [vmem:[#allocation7 + $0x4] sm:$0xf] %vm113_vm7, %v112_v50 }
 0x124   :  { %128 = dma.vmem_to_hbm [thread:$0]  %s121_s25, 128, %s123_s2, [#allocation4], %s236_s28, %s236_s28, %s237_s29  }
 0x125   :  { %228 = dma.done.wait [#allocation4], 128  }
 0x126   :  { %229 = vsyncadd [#allocation4], 4294967168 }
 0x127   :  { %133 = vsyncpa [#allocation3], 1 }
 0x128   :  { %134 = vsyncpa [#allocation6], 1 }
 0x129   :  { %135 = vsyncpa [#allocation4], 1 }

</bundles_post_ra>
